<compile_context>
chip_gen: v7x
topology: tpu7x:2x2x1
jax: 0.10.0
libtpu: 0.0.40
codegen_flags: <defaults>
</compile_context>

<pallas_src>
import jax
import jax.numpy as jnp
from jax.experimental import pallas as pl
from jax.experimental.pallas import tpu as pltpu


def _round_up(x, m):
    return ((x + m - 1) // m) * m


def _floor_to(x, m):
    return max(m, (x // m) * m)


def _unpool_kernel(idx_ref, h_ref, o_ref, acc_ref, onehot_ref):
    # idx_ref:    (1, TN)    int32   current N-chunk of indices
    # h_ref:      (TN, BC)   compute dtype (batch folded into columns)
    # o_ref:      (TP, BC)   output dtype, resident across the k axis
    # acc_ref:    (TP, BC)   f32 accumulator scratch
    # onehot_ref: (TP, TN)   compute-dtype one-hot slab scratch
    p = pl.program_id(0)
    k = pl.program_id(1)
    tp, tn = onehot_ref.shape

    @pl.when(k == 0)
    def _():
        acc_ref[...] = jnp.zeros_like(acc_ref)

    # onehot[r, j] = 1  iff  idx[k*TN + j] == p*TP + r   (padded idx = -1 never matches)
    rows = p * tp + jax.lax.broadcasted_iota(jnp.int32, (tp, tn), 0)
    onehot_ref[...] = (idx_ref[...] == rows).astype(onehot_ref.dtype)

    acc_ref[...] += jnp.dot(
        onehot_ref[...], h_ref[...], preferred_element_type=jnp.float32
    )

    @pl.when(k == pl.num_programs(1) - 1)
    def _():
        o_ref[...] = acc_ref[...].astype(o_ref.dtype)


def unpool(h, pre_node_num, idx, *, tile_p=512, tile_n=1024,
           vmem_budget_bytes=36 * 1024 * 1024):
    """Pallas unpool.  h: [N, C] or [B, N, C]; idx: [N] ints (unique).
    Returns [pre_node_num, C] or [B, pre_node_num, C]."""
    squeeze = h.ndim == 2
    if squeeze:
        h = h[None]
    B, N, C = h.shape
    P = int(pre_node_num)
    BC = B * C

    if jnp.issubdtype(h.dtype, jnp.floating):
        compute_dtype = h.dtype
    else:
        compute_dtype = jnp.float32
    out_dtype = h.dtype
    dsize = jnp.dtype(compute_dtype).itemsize
    osize = jnp.dtype(out_dtype).itemsize

    # Fold the batch into the matmul columns: [B, N, C] -> [N, B*C].
    h2 = jnp.transpose(h, (1, 0, 2)).reshape(N, BC).astype(compute_dtype)
    idx1 = jnp.asarray(idx, dtype=jnp.int32).reshape(-1)

    # ---- tile sizes (VMEM-budget aware; conservative enough for v7x). ----
    tn = min(_round_up(max(int(tile_n), 128), 128), _round_up(N, 128))
    P_out = _round_up(P, 8)
    tp = min(_round_up(max(int(tile_p), 8), 8), P_out)

    def _vmem(tp_, tn_):
        return (2 * tn_ * BC * dsize        # h block, double-buffered
                + 2 * 8 * tn_ * 4           # idx block (sublane-padded)
                + 2 * tp_ * BC * osize      # out block, double-buffered
                + tp_ * BC * 4              # f32 accumulator
                + tp_ * tn_ * dsize)        # one-hot slab

    while _vmem(tp, tn) > vmem_budget_bytes and tn > 128:
        tn = _floor_to(tn // 2, 128)
    while _vmem(tp, tn) > vmem_budget_bytes and tp > 8:
        tp = _floor_to(tp // 2, 8)

    N_pad = _round_up(N, tn)
    n_p = pl.cdiv(P_out, tp)
    n_k = N_pad // tn

    # Pad the contraction dim: padded idx = -1 (matches nothing), padded h = 0.
    if N_pad != N:
        h2 = jnp.pad(h2, ((0, N_pad - N), (0, 0)))
        idx1 = jnp.pad(idx1, (0, N_pad - N), constant_values=-1)
    idx2d = idx1.reshape(1, N_pad)

    cost = pl.CostEstimate(
        flops=2 * n_p * tp * N_pad * BC,
        transcendentals=0,
        bytes_accessed=n_p * N_pad * (BC * dsize + 4) + P_out * BC * osize,
    )

    out = pl.pallas_call(
        _unpool_kernel,
        out_shape=jax.ShapeDtypeStruct((P_out, BC), out_dtype),
        grid=(n_p, n_k),
        in_specs=[
            pl.BlockSpec((1, tn), lambda p, k: (0, k)),    # idx chunk
            pl.BlockSpec((tn, BC), lambda p, k: (k, 0)),   # h chunk (batch-folded)
        ],
        out_specs=pl.BlockSpec((tp, BC), lambda p, k: (p, 0)),
        scratch_shapes=[
            pltpu.VMEM((tp, BC), jnp.float32),     # accumulator
            pltpu.VMEM((tp, tn), compute_dtype),   # one-hot slab
        ],
        compiler_params=pltpu.CompilerParams(
            dimension_semantics=("parallel", "arbitrary"),
            vmem_limit_bytes=48 * 1024 * 1024,
        ),
        cost_estimate=cost,
    )(idx2d, h2)

    out = out[:P]
    if squeeze:
        return out                                      # (P, C)   (BC == C)
    return jnp.transpose(out.reshape(P, B, C), (1, 0, 2))  # (B, P, C)


if __name__ == "__main__":
    key = jax.random.PRNGKey(0)
    k1, k2, k3, k4, k5 = jax.random.split(key, 5)

    # ---- 3D case, f32: [B, N, C] -> [B, P, C] ----
    B, N, C = 2, 8, 32
    P = 16
    idx = jax.random.permutation(k1, P)[:N].astype(jnp.int32)
    h3 = jax.random.normal(k2, (B, N, C), dtype=jnp.float32)
    out3 = jax.block_until_ready(unpool(h3, P, idx))
    ref3 = jnp.zeros((B, P, C), h3.dtype).at[:, idx].set(h3)
    assert out3.shape == (B, P, C)
    assert jnp.allclose(out3, ref3, atol=1e-6), "3D unpool mismatch"

    # ---- 2D case, f32: [N, C] -> [P, C] ----
    h2 = jax.random.normal(k3, (N, C), dtype=jnp.float32)
    out2 = jax.block_until_ready(unpool(h2, P, idx))
    ref2 = jnp.zeros((P, C), h2.dtype).at[idx].set(h2)
    assert out2.shape == (P, C)
    assert jnp.allclose(out2, ref2, atol=1e-6), "2D unpool mismatch"

    # ---- bf16, forced P tiling (multi p-tile grid, ragged-free) ----
    h3b = h3.astype(jnp.bfloat16)
    out3b = jax.block_until_ready(unpool(h3b, P, idx, tile_p=8))
    ref3b = jnp.zeros((B, P, C), jnp.bfloat16).at[:, idx].set(h3b)
    assert out3b.shape == (B, P, C)
    assert jnp.allclose(out3b.astype(jnp.float32), ref3b.astype(jnp.float32),
                        atol=1e-2), "bf16 tiled unpool mismatch"

    # ---- multi-tile contraction + ragged P tile (exercises accumulator,
    #      N padding with idx=-1, and a partial final output block) ----
    B2, N2, C2, P2 = 2, 200, 8, 300
    idx2 = jax.random.permutation(k4, P2)[:N2].astype(jnp.int32)
    h4 = jax.random.normal(k5, (B2, N2, C2), dtype=jnp.float32)
    out4 = jax.block_until_ready(unpool(h4, P2, idx2, tile_p=128, tile_n=128))
    ref4 = jnp.zeros((B2, P2, C2), h4.dtype).at[:, idx2].set(h4)
    assert out4.shape == (B2, P2, C2)
    assert jnp.allclose(out4, ref4, atol=1e-6), "tiled-N unpool mismatch"

    print("KERNEL_OK")
</pallas_src>

<mosaic_0001>
module attributes {stable_mosaic.version = 11 : i64} {
  func.func @_unpool_kernel(%arg0: i32, %arg1: i32, %arg2: memref<1x128xi32, #tpu.memory_space<vmem>>, %arg3: memref<128x64xf32, #tpu.memory_space<vmem>>, %arg4: memref<16x64xf32, #tpu.memory_space<vmem>>, %arg5: memref<16x64xf32, #tpu.memory_space<vmem>>, %arg6: memref<16x128xf32, #tpu.memory_space<vmem>>) attributes {dimension_semantics = [#tpu.dimension_semantics<parallel>, #tpu.dimension_semantics<arbitrary>], iteration_bounds = array<i64: 1, 1>, scalar_prefetch = 0 : i64, scratch_operands = 2 : i64, tpu.core_type = #tpu.core_type<tc>, window_params = [{transform_indices = @transform_0, window_bounds = array<i64: 1, 128>}, {transform_indices = @transform_1, window_bounds = array<i64: 128, 64>}, {transform_indices = @transform_2, window_bounds = array<i64: 16, 64>}]} {
    %c0_i32 = arith.constant 0 : i32
    %0 = arith.cmpi eq, %arg1, %c0_i32 : i32
    %1 = arith.extui %0 : i1 to i32
    %c0_i32_0 = arith.constant 0 : i32
    %2 = arith.cmpi ne, %1, %c0_i32_0 : i32
    scf.if %2 {
      %cst_14 = arith.constant 0.000000e+00 : f32
      %22 = vector.broadcast %cst_14 : f32 to vector<16x64xf32>
      %c0_15 = arith.constant 0 : index
      %c0_16 = arith.constant 0 : index
      %23 = vector.load %arg5[%c0_15, %c0_16] : memref<16x64xf32, #tpu.memory_space<vmem>>, vector<16x64xf32>
      tpu.vector_store %arg5[%c0_15, %c0_16], %22 {strides = array<i32>} : memref<16x64xf32, #tpu.memory_space<vmem>>, vector<16x64xf32>,
    } else {
    }
    %c16_i32 = arith.constant 16 : i32
    %3 = arith.muli %arg0, %c16_i32 : i32
    %4 = tpu.iota {dimensions = array<i32: 0>} : vector<16x128xi32>
    %5 = vector.broadcast %3 : i32 to vector<16x128xi32>
    %6 = arith.addi %5, %4 : vector<16x128xi32>
    %c0 = arith.constant 0 : index
    %c0_1 = arith.constant 0 : index
    %7 = vector.load %arg2[%c0, %c0_1] : memref<1x128xi32, #tpu.memory_space<vmem>>, vector<1x128xi32>
    %8 = vector.broadcast %7 : vector<1x128xi32> to vector<16x128xi32>
    %9 = arith.cmpi eq, %8, %6 : vector<16x128xi32>
    %10 = arith.extui %9 : vector<16x128xi1> to vector<16x128xi32>
    %11 = arith.sitofp %10 : vector<16x128xi32> to vector<16x128xf32>
    %c0_2 = arith.constant 0 : index
    %c0_3 = arith.constant 0 : index
    %12 = vector.load %arg6[%c0_2, %c0_3] : memref<16x128xf32, #tpu.memory_space<vmem>>, vector<16x128xf32>
    tpu.vector_store %arg6[%c0_2, %c0_3], %11 {strides = array<i32>} : memref<16x128xf32, #tpu.memory_space<vmem>>, vector<16x128xf32>,
    %c0_4 = arith.constant 0 : index
    %c0_5 = arith.constant 0 : index
    %13 = vector.load %arg5[%c0_4, %c0_5] : memref<16x64xf32, #tpu.memory_space<vmem>>, vector<16x64xf32>
    %c0_6 = arith.constant 0 : index
    %c0_7 = arith.constant 0 : index
    %14 = vector.load %arg6[%c0_6, %c0_7] : memref<16x128xf32, #tpu.memory_space<vmem>>, vector<16x128xf32>
    %c0_8 = arith.constant 0 : index
    %c0_9 = arith.constant 0 : index
    %15 = vector.load %arg3[%c0_8, %c0_9] : memref<128x64xf32, #tpu.memory_space<vmem>>, vector<128x64xf32>
    %cst = arith.constant dense<0.000000e+00> : vector<16x64xf32>
    %16 = tpu.matmul %14, %15, %cst {dimension_numbers = #tpu.dot_dimension_numbers<[1], [0], [0], [1], [0, 0, 1, 1], [], []>} : vector<16x128xf32>, vector<128x64xf32>, vector<16x64xf32> -> vector<16x64xf32>
    %17 = arith.addf %13, %16 : vector<16x64xf32>
    %c0_10 = arith.constant 0 : index
    %c0_11 = arith.constant 0 : index
    %18 = vector.load %arg5[%c0_10, %c0_11] : memref<16x64xf32, #tpu.memory_space<vmem>>, vector<16x64xf32>
    tpu.vector_store %arg5[%c0_10, %c0_11], %17 {strides = array<i32>} : memref<16x64xf32, #tpu.memory_space<vmem>>, vector<16x64xf32>,
    %c0_i32_12 = arith.constant 0 : i32
    %19 = arith.cmpi eq, %arg1, %c0_i32_12 : i32
    %20 = arith.extui %19 : i1 to i32
    %c0_i32_13 = arith.constant 0 : i32
    %21 = arith.cmpi ne, %20, %c0_i32_13 : i32
    scf.if %21 {
      %c0_14 = arith.constant 0 : index
      %c0_15 = arith.constant 0 : index
      %22 = vector.load %arg5[%c0_14, %c0_15] : memref<16x64xf32, #tpu.memory_space<vmem>>, vector<16x64xf32>
      %c0_16 = arith.constant 0 : index
      %c0_17 = arith.constant 0 : index
      %23 = vector.load %arg4[%c0_16, %c0_17] : memref<16x64xf32, #tpu.memory_space<vmem>>, vector<16x64xf32>
      tpu.vector_store %arg4[%c0_16, %c0_17], %22 {strides = array<i32>} : memref<16x64xf32, #tpu.memory_space<vmem>>, vector<16x64xf32>,
    } else {
    }
    return
  }
  func.func @transform_0(%arg0: i32, %arg1: i32) -> (i32, i32) {
    %c0_i32 = arith.constant 0 : i32
    %c0_i32_0 = arith.constant 0 : i32
    return %c0_i32, %arg1 : i32, i32
  }
  func.func @transform_1(%arg0: i32, %arg1: i32) -> (i32, i32) {
    %c0_i32 = arith.constant 0 : i32
    %c0_i32_0 = arith.constant 0 : i32
    return %arg1, %c0_i32 : i32, i32
  }
  func.func @transform_2(%arg0: i32, %arg1: i32) -> (i32, i32) {
    %c0_i32 = arith.constant 0 : i32
    %c0_i32_0 = arith.constant 0 : i32
    return %arg0, %c0_i32 : i32, i32
  }
}

</mosaic_0001>

<bundles_post_ra>
// kernel: tpu_custom_call.1
= control target key start
LH: loop header
LB: loop body
LE: loop exit
PB: predicated region body
PF: predicated region fallthrough
CT: control target
= control target key end

     0   :  { %v20_v3 = vlaneseq  ;;  %vm16_vm0 = vcmask 523264   ;;  %v281_v6 = vmov 0.0   ;;  %s370_s0 = inlined_call_operand.vmem [shape: s32[1,128], index: 0, kind: input, shape index: {}]   ;;  %s371_s1 = inlined_call_operand.vmem [shape: f32[128,64], index: 1, kind: input, shape index: {}]   ;;  %s372_s2 = inlined_call_operand.hbm [shape: f32[16,64], index: 2, kind: output, shape index: {}]  }
   0x1   :  { %v43_v0 = vld [vmem:[%s371_s1] sm:$0xff]  ;;  %v44_v1 = vld [vmem:[%s371_s1 + $0x8] sm:$0xff]  ;;  %v45_v2 = vld [vmem:[%s371_s1 + $0x10] sm:$0xff]  ;;  %18 = vst.msk [vmem:[#allocation2 + $0x8] sm:$0xff] %vm16_vm0, %v281_v6 }
   0x2   :  { %v220_v4 = vpack.c.bf16 %v44_v1, %v43_v0  ;;  %v46_v5 = vld [vmem:[%s371_s1 + $0x18] sm:$0xff]  ;;  %17 = vst.msk [vmem:[#allocation2] sm:$0xff] %vm16_vm0, %v281_v6  ;;  %v47_v8 = vld [vmem:[%s371_s1 + $0x20] sm:$0xff]  ;;  %v48_v9 = vld [vmem:[%s371_s1 + $0x28] sm:$0xff]  ;;  %v21_v10 = vshrl.u32 %v20_v3, 7 }
   0x3   :  { %v224_v7 = vpack.c.bf16 %v46_v5, %v45_v2  ;;  %v228_v11 = vpack.c.bf16 %v48_v9, %v47_v8  ;;  %v162_v12 = vld [vmem:[%s370_s0] ss:$0 sm:$0xff] }
   0x4   :  { %221 = vmatprep.subr.bf16.mxu0 %v220_v4 }
   0x5   :  { %223 = vmatpush3.bf16.msra.mxu0 %v220_v4 }
   0x6   :  { %225 = vmatprep.subr.bf16.mxu0 %v224_v7 }
   0x7   :  { %7 = vsyncpa [#allocation5], 0  ;;  %v49_v13 = vld [vmem:[%s371_s1 + $0x30] sm:$0xff]  ;;  %v50_v14 = vld [vmem:[%s371_s1 + $0x38] sm:$0xff]  ;;  %vm31_vm1 = vcmp.eq.s32.totalorder %v162_v12, %v21_v10  ;;  %v282_v15 = vmov 1.0   ;;  %v22_v29 = vadd.s32 8, %v21_v10 }
   0x8   :  { %217 = vmatprep.mubr.msk.f32.mxu0 %vm31_vm1, %v282_v15  ;;  %v232_v16 = vpack.c.bf16 %v50_v14, %v49_v13  ;;  %v51_v17 = vld [vmem:[%s371_s1 + $0x40] sm:$0xff]  ;;  %v52_v18 = vld [vmem:[%s371_s1 + $0x48] sm:$0xff]  ;;  %v53_v20 = vld [vmem:[%s371_s1 + $0x50] sm:$0xff] }
   0x9   :  { %227 = vmatpush3.bf16.msra.mxu0 %v224_v7  ;;  %v236_v19 = vpack.c.bf16 %v52_v18, %v51_v17  ;;  %v54_v21 = vld [vmem:[%s371_s1 + $0x58] sm:$0xff]  ;;  %v55_v23 = vld [vmem:[%s371_s1 + $0x60] sm:$0xff]  ;;  %v56_v24 = vld [vmem:[%s371_s1 + $0x68] sm:$0xff]  ;;  %vm32_vm2 = vcmp.eq.s32.totalorder %v162_v12, %v22_v29 }
   0xa   :  { %229 = vmatprep.subr.bf16.mxu0 %v228_v11  ;;  %v240_v22 = vpack.c.bf16 %v54_v21, %v53_v20  ;;  %v244_v25 = vpack.c.bf16 %v56_v24, %v55_v23  ;;  %v57_v26 = vld [vmem:[%s371_s1 + $0x70] sm:$0xff]  ;;  %v58_v27 = vld [vmem:[%s371_s1 + $0x78] sm:$0xff]  ;;  %v40_v30 = vld [vmem:[#allocation2 + $0x8] sm:$0xff]  ;;  %s283_s1 = smov [#allocation4]  }
   0xb   :  { %v248_v28 = vpack.c.bf16 %v58_v27, %v57_v26  ;;  %v39_v31 = vld [vmem:[#allocation2] sm:$0xff]  ;;  %s151_s14 = sshll.u32 %s283_s1, 4  ;;  %s152_s14 = int_to_ptr.vmem [resolvable:$true] %s151_s14 }
   0xc   :  { %s257_s15 = scalar_lea.vmem %s152_s14, 256  ;;  %p262_p1 = scmp.lt.s32.totalorder %s152_s14, %s152_s14 }
   0xd   :  { %231 = vmatpush3.bf16.msra.mxu0 %v228_v11  ;;  %p258_p0 = scmp.ne.s32.totalorder %s152_s14, %s257_s15  ;;  %p263_p2 = scmp.lt.s32.totalorder %s257_s15, %s257_s15 }
   0xe   :  { %233 = vmatprep.subr.bf16.mxu0 %v232_v16 }
   0xf   :  { %p264_p3 = por %p263_p2, %p262_p1 }
  0x11   :  { %235 = vmatpush3.bf16.msra.mxu0 %v232_v16  ;;  %p265_p4 = pnand %p264_p3, %p258_p0 }
  0x12   :  { %237 = vmatprep.subr.bf16.mxu0 %v236_v19 }
  0x15   :  { %239 = vmatpush3.bf16.msra.mxu0 %v236_v19 }
  0x16   :  { %241 = vmatprep.subr.bf16.mxu0 %v240_v22 }
  0x19   :  { %243 = vmatpush3.bf16.msra.mxu0 %v240_v22 }
  0x1a   :  { %245 = vmatprep.subr.bf16.mxu0 %v244_v25 }
  0x1d   :  { %247 = vmatpush3.bf16.msra.mxu0 %v244_v25 }
  0x1e   :  { %249 = vmatprep.subr.bf16.mxu0 %v248_v28 }
  0x21   :  { %251 = vmatpush3.bf16.msra.mxu0 %v248_v28 }
  0x24   :  { %218 = vmatmul.mubr.msk.f32.vlgmr.msra.gmra.mrb[0].mxu0 %vm32_vm2, %v282_v15 }
  0xf7   :  { %v219_v32 = vpop.f32.mrb[0].mxu0 }
  0xf8   :  { %v135_v33 = vadd.f32 %v219_v32, %v40_v30  ;;  %v125_v34 = vpop.f32.mrb[1].mxu0 }
  0xf9   :  { %v134_v35 = vadd.f32 %v125_v34, %v39_v31 }
  0xfa   :  { %138 = vst.msk [vmem:[#allocation2 + $0x8] sm:$0xff] %vm16_vm0, %v135_v33 }
  0xfb   :  { %137 = vst.msk [vmem:[#allocation2] sm:$0xff] %vm16_vm0, %v134_v35 }
 0x101   :  { %v143_v36 = vld [vmem:[#allocation2 + $0x8] sm:$0xff] }
 0x102   :  { %v142_v37 = vld [vmem:[#allocation2] sm:$0xff]  ;;  %145 = vst.msk [vmem:[#allocation4 + $0x8] sm:$0xff] %vm16_vm0, %v143_v36 }
 0x103   :  { %144 = vst.msk [vmem:[#allocation4] sm:$0xff] %vm16_vm0, %v142_v37 }
 0x104   :  { %268 = shalt.err (!%p265_p4)
}
 0x105   :  { %s269_s18 = scalar_lea.hbm %s372_s2, 256 }
 0x106   :  { %p270_p5 = scmp.ne.s32.totalorder %s372_s2, %s269_s18  ;;  %p273_p6 = scmp.lt.u32.totalorder %s269_s18, %s372_s2 }
 0x108   :  { %p275_p7 = pnand %p273_p6, %p270_p5 }
 0x10a   :  { %278 = shalt.err (!%p275_p7)
}
 0x10b   :  { %s284_s23 = smov 128   ;;  %s285_s24 = smov 8  }
 0x10c   :  { %157 = dma.vmem_to_hbm [thread:$0]  %s152_s14, 256, %s372_s2, [#allocation5], %s284_s23, %s284_s23, %s285_s24  }
 0x10d   :  { %279 = dma.done.wait [#allocation5], 256  }
 0x10e   :  { %280 = vsyncadd [#allocation5], 4294967040 }
 0x10f   :  { %161 = vsyncpa [#allocation5], 1 }

</bundles_post_ra>
